<compile_context>
chip_gen: v7x
topology: tpu7x:2x2x1
jax: 0.10.0
libtpu: 0.0.40
codegen_flags: <defaults>
</compile_context>

<pallas_src>
import functools
from typing import NamedTuple

import jax
import jax.numpy as jnp
from jax.experimental import pallas as pl
from jax.experimental.pallas import tpu as pltpu

LANE = 128            # lane width (last dim)
MAX_BATCH_TILE = 1024  # cap on rows per grid step


def _round_up(n, m):
    return ((n + m - 1) // m) * m


def _cdiv(a, b):
    return -(-a // b)


def _pad2d(a, rows, cols):
    """Zero-pad a 2-D array up to (rows, cols)."""
    return jnp.pad(a, ((0, rows - a.shape[0]), (0, cols - a.shape[1])))


def _device_kind():
    try:
        return jax.devices()[0].device_kind.lower()
    except Exception:
        return ""


def _has_two_tensorcores():
    # v7x (and v4/v5p megacore) have 2 TensorCores per chip; v5e/v6e have 1.
    kind = _device_kind()
    return any(tag in kind for tag in ("v7", "v4", "v5p"))


def _mxu_is_256():
    # v6e/v7x MXUs are 256x256 (v5e is 4x 128x128).
    kind = _device_kind()
    return ("v6" in kind) or ("v7" in kind)


class DQNParams(NamedTuple):
    """Pre-padded, pre-cast parameters (build once with prepare_params)."""
    w1: jax.Array
    b1: jax.Array
    w2: jax.Array
    b2: jax.Array
    w3: jax.Array
    b3: jax.Array
    output_size: int   # un-padded Q-value count (kept static, never jitted)


def prepare_params(w1, b1, w2, b2, w3, b3, compute_dtype=jnp.bfloat16):
    """Pad feature dims to the lane/MXU grid and cast matmul operands ONCE.

    Call after init and after each optimizer step; dqn_forward then does no
    per-call padding/casting of the weights.  Weights are (in, out); biases
    stay f32 (they are added to the f32 accumulator inside the kernel).
    """
    input_size, hidden_size = w1.shape
    output_size = w3.shape[1]
    # v6e/v7x MXU is 256 wide; only bother once hidden > 128 (otherwise the
    # extra zero padding is wasted FLOPs on a non-MXU-bound kernel).
    hidden_align = 256 if (hidden_size > 128 and _mxu_is_256()) else LANE
    kp = _round_up(input_size, LANE)
    hp = _round_up(hidden_size, hidden_align)
    op = _round_up(output_size, LANE)
    return DQNParams(
        w1=_pad2d(w1, kp, hp).astype(compute_dtype),
        b1=_pad2d(b1.reshape(1, -1), 1, hp).astype(jnp.float32),
        w2=_pad2d(w2, hp, hp).astype(compute_dtype),
        b2=_pad2d(b2.reshape(1, -1), 1, hp).astype(jnp.float32),
        w3=_pad2d(w3, hp, op).astype(compute_dtype),
        b3=_pad2d(b3.reshape(1, -1), 1, op).astype(jnp.float32),
        output_size=output_size,
    )


def dqn_mlp_kernel(x_ref, w1_ref, b1_ref, w2_ref, b2_ref, w3_ref, b3_ref, o_ref):
    """Fused fc1 -> relu -> fc2 -> relu -> fc3 on one (TB, K) batch tile.

    Matmul operands may be bf16 -- the native MXU input type on v5e, v6e and
    v7x alike; accumulation is always f32 via preferred_element_type, and the
    bias add / ReLU stay in f32 (v5e's VPU is f32-only, and it preserves DQN
    numerics).
    """
    x = x_ref[...]
    h1 = jnp.dot(x, w1_ref[...], preferred_element_type=jnp.float32) + b1_ref[...]
    h1 = jnp.maximum(h1, 0.0)
    h2 = jnp.dot(h1.astype(w2_ref.dtype), w2_ref[...],
                 preferred_element_type=jnp.float32) + b2_ref[...]
    h2 = jnp.maximum(h2, 0.0)
    out = jnp.dot(h2.astype(w3_ref.dtype), w3_ref[...],
                  preferred_element_type=jnp.float32) + b3_ref[...]
    # TODO(synk): optionally fuse the consumer (argmax for action selection /
    # gather(actions) for the TD loss) here and emit a narrow output instead
    # of the lane-padded Q tensor + wrapper slice; padded lanes would need a
    # -inf mask before any argmax.
    o_ref[...] = out.astype(o_ref.dtype)


@functools.partial(
    jax.jit,
    static_argnames=("output_size", "num_batch_tiles", "single_buffer_weights"))
def _dqn_forward_jit(x, w1, b1, w2, b2, w3, b3, *, output_size,
                     num_batch_tiles, single_buffer_weights):
    batch, input_size = x.shape
    kp, hp = w1.shape
    op = w3.shape[1]
    if input_size > kp:
        raise ValueError(
            f"x has {input_size} features but params were prepared for <= {kp}.")

    compute_dtype = w1.dtype
    itemsize = jnp.dtype(compute_dtype).itemsize
    sublane = max(8, 32 // itemsize)       # 8 (f32) / 16 (bf16) / 32 (int8,fp8)

    # ---- batch tiling: one grid step unless split across TensorCores -------
    tiles = max(1, int(num_batch_tiles))
    if batch < tiles * LANE:               # tiny batches: not worth splitting
        tiles = 1
    tb = _round_up(_cdiv(batch, tiles), sublane)
    if tb > MAX_BATCH_TILE:                # very large batches: more tiles
        tiles = _cdiv(batch, MAX_BATCH_TILE)
        tb = _round_up(_cdiv(batch, tiles), sublane)
    bp = _round_up(batch, tb)
    grid = (bp // tb,)

    # Only x gets padded per call (weights were padded once in prepare_params).
    x_p = _pad2d(x, bp, kp).astype(compute_dtype)

    # ---- VMEM budget guard (weights are held fully resident, un-tiled) -----
    w_buffers = 1 if single_buffer_weights else 2
    weight_bytes = (kp * hp + hp * hp + hp * op) * itemsize + (2 * hp + op) * 4
    io_bytes = 2 * (tb * kp * itemsize + tb * op * 4)   # double-buffered x/out
    vmem_need = w_buffers * weight_bytes + io_bytes
    if weight_bytes > 56 * 1024 * 1024:
        # TODO(synk): add a hidden-dim (K/N) tiling fallback for hidden >= ~4K;
        # fully-resident f32 weights cannot fit v7x's 64 MiB physical VMEM.
        raise ValueError(
            f"resident weights need {weight_bytes / 2**20:.1f} MiB VMEM; tile "
            "the hidden dim or prepare params with compute_dtype=bfloat16.")
    vmem_limit = int(min(max(2 * vmem_need, 4 << 20), 100 << 20))

    # Grid-invariant weights/biases: same block index every step -> VMEM
    # resident, no re-DMA; single-buffer them to halve their footprint.
    spec_kwargs = {"pipeline_mode": pl.Buffered(1)} if single_buffer_weights else {}
    resident = lambda shape: pl.BlockSpec(shape, lambda i: (0, 0), **spec_kwargs)
    in_specs = [
        pl.BlockSpec((tb, kp), lambda i: (i, 0)),   # x tile moves with the grid
        resident((kp, hp)), resident((1, hp)),      # fc1
        resident((hp, hp)), resident((1, hp)),      # fc2
        resident((hp, op)), resident((1, op)),      # fc3
    ]
    out_spec = pl.BlockSpec((tb, op), lambda i: (i, 0))   # lane-dense store

    cost = pl.CostEstimate(
        flops=2 * bp * (kp * hp + hp * hp + hp * op),
        transcendentals=0,
        bytes_accessed=bp * kp * itemsize + weight_bytes + bp * op * 4,
    )

    out_padded = pl.pallas_call(
        dqn_mlp_kernel,
        out_shape=jax.ShapeDtypeStruct((bp, op), jnp.float32),
        grid=grid,
        in_specs=in_specs,
        out_specs=out_spec,
        compiler_params=pltpu.CompilerParams(
            dimension_semantics=("parallel",),
            vmem_limit_bytes=vmem_limit),
        cost_estimate=cost,
    )(x_p, w1, b1, w2, b2, w3, b3)

    # Slice away batch / output-lane padding (padded Q lanes are exactly 0;
    # never argmax over the padded tensor directly).
    return out_padded[:batch, :output_size]


_SINGLE_BUFFER_OK = True   # flipped off if this JAX build rejects pl.Buffered
                           # as a pipeline_mode on pallas_call BlockSpecs.


def dqn_forward(x, params: DQNParams, *, num_batch_tiles=None):
    """Forward pass: x (B, input_size) f32 -> Q-values (B, output_size) f32."""
    global _SINGLE_BUFFER_OK
    if num_batch_tiles is None:
        num_batch_tiles = (
            2 if (_has_two_tensorcores() and x.shape[0] >= 2 * LANE) else 1)
    arrays = params[:-1]
    if _SINGLE_BUFFER_OK:
        try:
            return jax.block_until_ready(_dqn_forward_jit(
                x, *arrays, output_size=params.output_size,
                num_batch_tiles=num_batch_tiles, single_buffer_weights=True))
        except Exception:
            _SINGLE_BUFFER_OK = False   # fall back to default double buffering
    return _dqn_forward_jit(
        x, *arrays, output_size=params.output_size,
        num_batch_tiles=num_batch_tiles, single_buffer_weights=False)


def init_params(key, input_size, hidden_size, output_size):
    """Deterministic PyTorch-style (uniform +/- 1/sqrt(fan_in)) init."""
    ks = jax.random.split(key, 6)

    def linear(kw, kb, fan_in, fan_out):
        bound = 1.0 / jnp.sqrt(jnp.float32(fan_in))
        w = jax.random.uniform(kw, (fan_in, fan_out), jnp.float32, -bound, bound)
        b = jax.random.uniform(kb, (fan_out,), jnp.float32, -bound, bound)
        return w, b

    w1, b1 = linear(ks[0], ks[1], input_size, hidden_size)
    w2, b2 = linear(ks[2], ks[3], hidden_size, hidden_size)
    w3, b3 = linear(ks[4], ks[5], hidden_size, output_size)
    return w1, b1, w2, b2, w3, b3


def _reference(x, w1, b1, w2, b2, w3, b3):
    h = jnp.maximum(x @ w1 + b1, 0.0)
    h = jnp.maximum(h @ w2 + b2, 0.0)
    return h @ w3 + b3


if __name__ == "__main__":
    input_size, hidden_size, output_size = 8, 32, 4
    key = jax.random.PRNGKey(0)
    k_x, k_p, k_xb = jax.random.split(key, 3)
    w1, b1, w2, b2, w3, b3 = init_params(k_p, input_size, hidden_size, output_size)

    # Padding / casting of the weights happens ONCE here, not per forward call.
    params_f32 = prepare_params(w1, b1, w2, b2, w3, b3, compute_dtype=jnp.float32)
    params_bf16 = prepare_params(w1, b1, w2, b2, w3, b3)   # bf16 MXU operands

    # --- tiny batch (B=2, action selection), exact f32 path -----------------
    x_small = jax.random.normal(k_x, (2, input_size), jnp.float32)
    ref_small = _reference(x_small, w1, b1, w2, b2, w3, b3)
    out_small = jax.block_until_ready(dqn_forward(x_small, params_f32))
    assert out_small.shape == (2, output_size)
    assert jnp.allclose(out_small, ref_small, atol=1e-5), "f32 small-batch mismatch"

    # --- replay-buffer-sized batch: single-step grid (2 tiles on 2-TC chips) -
    x_big = jax.random.normal(k_xb, (300, input_size), jnp.float32)
    ref_big = _reference(x_big, w1, b1, w2, b2, w3, b3)
    out_big = jax.block_until_ready(dqn_forward(x_big, params_f32))
    assert out_big.shape == (300, output_size)
    assert jnp.allclose(out_big, ref_big, atol=1e-5), "f32 batched mismatch"

    # --- explicitly exercise the 2-tile (megacore-style) batch split --------
    out_tiled = jax.block_until_ready(
        dqn_forward(x_big, params_f32, num_batch_tiles=2))
    assert jnp.allclose(out_tiled, ref_big, atol=1e-5), "2-tile mismatch"

    # --- default bf16 matmul-operand path (f32 accumulation) ----------------
    out_bf16 = jax.block_until_ready(dqn_forward(x_big, params_bf16))
    assert out_bf16.shape == (300, output_size)
    assert jnp.allclose(out_bf16, ref_big, atol=5e-2, rtol=5e-2), "bf16 mismatch"

    print("KERNEL_OK")
</pallas_src>

<mosaic_0001>
module attributes {stable_mosaic.version = 11 : i64} {
  func.func @dqn_mlp_kernel(%arg0: i32, %arg1: memref<8x128xf32, #tpu.memory_space<vmem>>, %arg2: memref<128x128xf32, #tpu.memory_space<vmem>>, %arg3: memref<1x128xf32, #tpu.memory_space<vmem>>, %arg4: memref<128x128xf32, #tpu.memory_space<vmem>>, %arg5: memref<1x128xf32, #tpu.memory_space<vmem>>, %arg6: memref<128x128xf32, #tpu.memory_space<vmem>>, %arg7: memref<1x128xf32, #tpu.memory_space<vmem>>, %arg8: memref<8x128xf32, #tpu.memory_space<vmem>>) attributes {dimension_semantics = [#tpu.dimension_semantics<parallel>], iteration_bounds = array<i64: 1>, scalar_prefetch = 0 : i64, scratch_operands = 0 : i64, tpu.core_type = #tpu.core_type<tc>, window_params = [{transform_indices = @transform_0, window_bounds = array<i64: 8, 128>}, {pipeline_mode = #tpu.pipeline_mode<synchronous>, transform_indices = @transform_1, window_bounds = array<i64: 128, 128>}, {pipeline_mode = #tpu.pipeline_mode<synchronous>, transform_indices = @transform_2, window_bounds = array<i64: 1, 128>}, {pipeline_mode = #tpu.pipeline_mode<synchronous>, transform_indices = @transform_3, window_bounds = array<i64: 128, 128>}, {pipeline_mode = #tpu.pipeline_mode<synchronous>, transform_indices = @transform_4, window_bounds = array<i64: 1, 128>}, {pipeline_mode = #tpu.pipeline_mode<synchronous>, transform_indices = @transform_5, window_bounds = array<i64: 128, 128>}, {pipeline_mode = #tpu.pipeline_mode<synchronous>, transform_indices = @transform_6, window_bounds = array<i64: 1, 128>}, {transform_indices = @transform_7, window_bounds = array<i64: 8, 128>}]} {
    %c0 = arith.constant 0 : index
    %c0_0 = arith.constant 0 : index
    %0 = vector.load %arg1[%c0, %c0_0] : memref<8x128xf32, #tpu.memory_space<vmem>>, vector<8x128xf32>
    %c0_1 = arith.constant 0 : index
    %c0_2 = arith.constant 0 : index
    %1 = vector.load %arg2[%c0_1, %c0_2] : memref<128x128xf32, #tpu.memory_space<vmem>>, vector<128x128xf32>
    %cst = arith.constant dense<0.000000e+00> : vector<8x128xf32>
    %2 = tpu.matmul %0, %1, %cst {dimension_numbers = #tpu.dot_dimension_numbers<[1], [0], [0], [1], [0, 0, 1, 1], [], []>} : vector<8x128xf32>, vector<128x128xf32>, vector<8x128xf32> -> vector<8x128xf32>
    %c0_3 = arith.constant 0 : index
    %c0_4 = arith.constant 0 : index
    %3 = vector.load %arg3[%c0_3, %c0_4] : memref<1x128xf32, #tpu.memory_space<vmem>>, vector<1x128xf32>
    %4 = vector.broadcast %3 : vector<1x128xf32> to vector<8x128xf32>
    %5 = arith.addf %2, %4 : vector<8x128xf32>
    %cst_5 = arith.constant 0.000000e+00 : f32
    %6 = vector.broadcast %cst_5 : f32 to vector<8x128xf32>
    %7 = arith.maximumf %5, %6 : vector<8x128xf32>
    %c0_6 = arith.constant 0 : index
    %c0_7 = arith.constant 0 : index
    %8 = vector.load %arg4[%c0_6, %c0_7] : memref<128x128xf32, #tpu.memory_space<vmem>>, vector<128x128xf32>
    %cst_8 = arith.constant dense<0.000000e+00> : vector<8x128xf32>
    %9 = tpu.matmul %7, %8, %cst_8 {dimension_numbers = #tpu.dot_dimension_numbers<[1], [0], [0], [1], [0, 0, 1, 1], [], []>} : vector<8x128xf32>, vector<128x128xf32>, vector<8x128xf32> -> vector<8x128xf32>
    %c0_9 = arith.constant 0 : index
    %c0_10 = arith.constant 0 : index
    %10 = vector.load %arg5[%c0_9, %c0_10] : memref<1x128xf32, #tpu.memory_space<vmem>>, vector<1x128xf32>
    %11 = vector.broadcast %10 : vector<1x128xf32> to vector<8x128xf32>
    %12 = arith.addf %9, %11 : vector<8x128xf32>
    %cst_11 = arith.constant 0.000000e+00 : f32
    %13 = vector.broadcast %cst_11 : f32 to vector<8x128xf32>
    %14 = arith.maximumf %12, %13 : vector<8x128xf32>
    %c0_12 = arith.constant 0 : index
    %c0_13 = arith.constant 0 : index
    %15 = vector.load %arg6[%c0_12, %c0_13] : memref<128x128xf32, #tpu.memory_space<vmem>>, vector<128x128xf32>
    %cst_14 = arith.constant dense<0.000000e+00> : vector<8x128xf32>
    %16 = tpu.matmul %14, %15, %cst_14 {dimension_numbers = #tpu.dot_dimension_numbers<[1], [0], [0], [1], [0, 0, 1, 1], [], []>} : vector<8x128xf32>, vector<128x128xf32>, vector<8x128xf32> -> vector<8x128xf32>
    %c0_15 = arith.constant 0 : index
    %c0_16 = arith.constant 0 : index
    %17 = vector.load %arg7[%c0_15, %c0_16] : memref<1x128xf32, #tpu.memory_space<vmem>>, vector<1x128xf32>
    %18 = vector.broadcast %17 : vector<1x128xf32> to vector<8x128xf32>
    %19 = arith.addf %16, %18 : vector<8x128xf32>
    %c0_17 = arith.constant 0 : index
    %c0_18 = arith.constant 0 : index
    %20 = vector.load %arg8[%c0_17, %c0_18] : memref<8x128xf32, #tpu.memory_space<vmem>>, vector<8x128xf32>
    tpu.vector_store %arg8[%c0_17, %c0_18], %19 {strides = array<i32>} : memref<8x128xf32, #tpu.memory_space<vmem>>, vector<8x128xf32>,
    return
  }
  func.func @transform_0(%arg0: i32) -> (i32, i32) {
    %c0_i32 = arith.constant 0 : i32
    %c0_i32_0 = arith.constant 0 : i32
    return %arg0, %c0_i32 : i32, i32
  }
  func.func @transform_1(%arg0: i32) -> (i32, i32) {
    %c0_i32 = arith.constant 0 : i32
    %c0_i32_0 = arith.constant 0 : i32
    %c0_i32_1 = arith.constant 0 : i32
    return %c0_i32, %c0_i32_0 : i32, i32
  }
  func.func @transform_2(%arg0: i32) -> (i32, i32) {
    %c0_i32 = arith.constant 0 : i32
    %c0_i32_0 = arith.constant 0 : i32
    %c0_i32_1 = arith.constant 0 : i32
    return %c0_i32, %c0_i32_0 : i32, i32
  }
  func.func @transform_3(%arg0: i32) -> (i32, i32) {
    %c0_i32 = arith.constant 0 : i32
    %c0_i32_0 = arith.constant 0 : i32
    %c0_i32_1 = arith.constant 0 : i32
    return %c0_i32, %c0_i32_0 : i32, i32
  }
  func.func @transform_4(%arg0: i32) -> (i32, i32) {
    %c0_i32 = arith.constant 0 : i32
    %c0_i32_0 = arith.constant 0 : i32
    %c0_i32_1 = arith.constant 0 : i32
    return %c0_i32, %c0_i32_0 : i32, i32
  }
  func.func @transform_5(%arg0: i32) -> (i32, i32) {
    %c0_i32 = arith.constant 0 : i32
    %c0_i32_0 = arith.constant 0 : i32
    %c0_i32_1 = arith.constant 0 : i32
    return %c0_i32, %c0_i32_0 : i32, i32
  }
  func.func @transform_6(%arg0: i32) -> (i32, i32) {
    %c0_i32 = arith.constant 0 : i32
    %c0_i32_0 = arith.constant 0 : i32
    %c0_i32_1 = arith.constant 0 : i32
    return %c0_i32, %c0_i32_0 : i32, i32
  }
  func.func @transform_7(%arg0: i32) -> (i32, i32) {
    %c0_i32 = arith.constant 0 : i32
    %c0_i32_0 = arith.constant 0 : i32
    return %arg0, %c0_i32 : i32, i32
  }
}

module attributes {stable_mosaic.version = 11 : i64} {
  func.func @dqn_mlp_kernel(%arg0: i32, %arg1: memref<8x128xf32, #tpu.memory_space<vmem>>, %arg2: memref<128x128xf32, #tpu.memory_space<vmem>>, %arg3: memref<1x128xf32, #tpu.memory_space<vmem>>, %arg4: memref<128x128xf32, #tpu.memory_space<vmem>>, %arg5: memref<1x128xf32, #tpu.memory_space<vmem>>, %arg6: memref<128x128xf32, #tpu.memory_space<vmem>>, %arg7: memref<1x128xf32, #tpu.memory_space<vmem>>, %arg8: memref<8x128xf32, #tpu.memory_space<vmem>>) attributes {dimension_semantics = [#tpu.dimension_semantics<parallel>], iteration_bounds = array<i64: 1>, scalar_prefetch = 0 : i64, scratch_operands = 0 : i64, tpu.core_type = #tpu.core_type<tc>, window_params = [{transform_indices = @transform_0, window_bounds = array<i64: 8, 128>}, {pipeline_mode = #tpu.pipeline_mode<synchronous>, transform_indices = @transform_1, window_bounds = array<i64: 128, 128>}, {pipeline_mode = #tpu.pipeline_mode<synchronous>, transform_indices = @transform_2, window_bounds = array<i64: 1, 128>}, {pipeline_mode = #tpu.pipeline_mode<synchronous>, transform_indices = @transform_3, window_bounds = array<i64: 128, 128>}, {pipeline_mode = #tpu.pipeline_mode<synchronous>, transform_indices = @transform_4, window_bounds = array<i64: 1, 128>}, {pipeline_mode = #tpu.pipeline_mode<synchronous>, transform_indices = @transform_5, window_bounds = array<i64: 128, 128>}, {pipeline_mode = #tpu.pipeline_mode<synchronous>, transform_indices = @transform_6, window_bounds = array<i64: 1, 128>}, {transform_indices = @transform_7, window_bounds = array<i64: 8, 128>}]} {
    %c0 = arith.constant 0 : index
    %c0_0 = arith.constant 0 : index
    %0 = vector.load %arg1[%c0, %c0_0] : memref<8x128xf32, #tpu.memory_space<vmem>>, vector<8x128xf32>
    %c0_1 = arith.constant 0 : index
    %c0_2 = arith.constant 0 : index
    %1 = vector.load %arg2[%c0_1, %c0_2] : memref<128x128xf32, #tpu.memory_space<vmem>>, vector<128x128xf32>
    %cst = arith.constant dense<0.000000e+00> : vector<8x128xf32>
    %2 = tpu.matmul %0, %1, %cst {dimension_numbers = #tpu.dot_dimension_numbers<[1], [0], [0], [1], [0, 0, 1, 1], [], []>} : vector<8x128xf32>, vector<128x128xf32>, vector<8x128xf32> -> vector<8x128xf32>
    %c0_3 = arith.constant 0 : index
    %c0_4 = arith.constant 0 : index
    %3 = vector.load %arg3[%c0_3, %c0_4] : memref<1x128xf32, #tpu.memory_space<vmem>>, vector<1x128xf32>
    %4 = vector.broadcast %3 : vector<1x128xf32> to vector<8x128xf32>
    %5 = arith.addf %2, %4 : vector<8x128xf32>
    %cst_5 = arith.constant 0.000000e+00 : f32
    %6 = vector.broadcast %cst_5 : f32 to vector<8x128xf32>
    %7 = arith.maximumf %5, %6 : vector<8x128xf32>
    %c0_6 = arith.constant 0 : index
    %c0_7 = arith.constant 0 : index
    %8 = vector.load %arg4[%c0_6, %c0_7] : memref<128x128xf32, #tpu.memory_space<vmem>>, vector<128x128xf32>
    %cst_8 = arith.constant dense<0.000000e+00> : vector<8x128xf32>
    %9 = tpu.matmul %7, %8, %cst_8 {dimension_numbers = #tpu.dot_dimension_numbers<[1], [0], [0], [1], [0, 0, 1, 1], [], []>} : vector<8x128xf32>, vector<128x128xf32>, vector<8x128xf32> -> vector<8x128xf32>
    %c0_9 = arith.constant 0 : index
    %c0_10 = arith.constant 0 : index
    %10 = vector.load %arg5[%c0_9, %c0_10] : memref<1x128xf32, #tpu.memory_space<vmem>>, vector<1x128xf32>
    %11 = vector.broadcast %10 : vector<1x128xf32> to vector<8x128xf32>
    %12 = arith.addf %9, %11 : vector<8x128xf32>
    %cst_11 = arith.constant 0.000000e+00 : f32
    %13 = vector.broadcast %cst_11 : f32 to vector<8x128xf32>
    %14 = arith.maximumf %12, %13 : vector<8x128xf32>
    %c0_12 = arith.constant 0 : index
    %c0_13 = arith.constant 0 : index
    %15 = vector.load %arg6[%c0_12, %c0_13] : memref<128x128xf32, #tpu.memory_space<vmem>>, vector<128x128xf32>
    %cst_14 = arith.constant dense<0.000000e+00> : vector<8x128xf32>
    %16 = tpu.matmul %14, %15, %cst_14 {dimension_numbers = #tpu.dot_dimension_numbers<[1], [0], [0], [1], [0, 0, 1, 1], [], []>} : vector<8x128xf32>, vector<128x128xf32>, vector<8x128xf32> -> vector<8x128xf32>
    %c0_15 = arith.constant 0 : index
    %c0_16 = arith.constant 0 : index
    %17 = vector.load %arg7[%c0_15, %c0_16] : memref<1x128xf32, #tpu.memory_space<vmem>>, vector<1x128xf32>
    %18 = vector.broadcast %17 : vector<1x128xf32> to vector<8x128xf32>
    %19 = arith.addf %16, %18 : vector<8x128xf32>
    %c0_17 = arith.constant 0 : index
    %c0_18 = arith.constant 0 : index
    %20 = vector.load %arg8[%c0_17, %c0_18] : memref<8x128xf32, #tpu.memory_space<vmem>>, vector<8x128xf32>
    tpu.vector_store %arg8[%c0_17, %c0_18], %19 {strides = array<i32>} : memref<8x128xf32, #tpu.memory_space<vmem>>, vector<8x128xf32>,
    return
  }
  func.func @transform_0(%arg0: i32) -> (i32, i32) {
    %c0_i32 = arith.constant 0 : i32
    %c0_i32_0 = arith.constant 0 : i32
    return %arg0, %c0_i32 : i32, i32
  }
  func.func @transform_1(%arg0: i32) -> (i32, i32) {
    %c0_i32 = arith.constant 0 : i32
    %c0_i32_0 = arith.constant 0 : i32
    %c0_i32_1 = arith.constant 0 : i32
    return %c0_i32, %c0_i32_0 : i32, i32
  }
  func.func @transform_2(%arg0: i32) -> (i32, i32) {
    %c0_i32 = arith.constant 0 : i32
    %c0_i32_0 = arith.constant 0 : i32
    %c0_i32_1 = arith.constant 0 : i32
    return %c0_i32, %c0_i32_0 : i32, i32
  }
  func.func @transform_3(%arg0: i32) -> (i32, i32) {
    %c0_i32 = arith.constant 0 : i32
    %c0_i32_0 = arith.constant 0 : i32
    %c0_i32_1 = arith.constant 0 : i32
    return %c0_i32, %c0_i32_0 : i32, i32
  }
  func.func @transform_4(%arg0: i32) -> (i32, i32) {
    %c0_i32 = arith.constant 0 : i32
    %c0_i32_0 = arith.constant 0 : i32
    %c0_i32_1 = arith.constant 0 : i32
    return %c0_i32, %c0_i32_0 : i32, i32
  }
  func.func @transform_5(%arg0: i32) -> (i32, i32) {
    %c0_i32 = arith.constant 0 : i32
    %c0_i32_0 = arith.constant 0 : i32
    %c0_i32_1 = arith.constant 0 : i32
    return %c0_i32, %c0_i32_0 : i32, i32
  }
  func.func @transform_6(%arg0: i32) -> (i32, i32) {
    %c0_i32 = arith.constant 0 : i32
    %c0_i32_0 = arith.constant 0 : i32
    %c0_i32_1 = arith.constant 0 : i32
    return %c0_i32, %c0_i32_0 : i32, i32
  }
  func.func @transform_7(%arg0: i32) -> (i32, i32) {
    %c0_i32 = arith.constant 0 : i32
    %c0_i32_0 = arith.constant 0 : i32
    return %arg0, %c0_i32 : i32, i32
  }
}

</mosaic_0001>

<bundles_post_ra>
// kernel: _dqn_forward_jit.1
= control target key start
LH: loop header
LB: loop body
LE: loop exit
PB: predicated region body
PF: predicated region fallthrough
CT: control target
= control target key end

     0   :  { %12 = vsyncpa [#allocation3], 0  ;;  %s810_s0 = inlined_call_operand.vmem [shape: f32[8,128], index: 0, kind: input, shape index: {}]   ;;  %s811_s1 = inlined_call_operand.hbm [shape: f32[128,128], index: 1, kind: input, shape index: {}]   ;;  %s812_s2 = inlined_call_operand.vmem [shape: f32[1,128], index: 2, kind: input, shape index: {}]   ;;  %s813_s3 = inlined_call_operand.hbm [shape: f32[128,128], index: 3, kind: input, shape index: {}]   ;;  %s814_s4 = inlined_call_operand.vmem [shape: f32[1,128], index: 4, kind: input, shape index: {}]   ;;  %s815_s5 = inlined_call_operand.hbm [shape: f32[128,128], index: 5, kind: input, shape index: {}]   ;;  %s816_s6 = inlined_call_operand.vmem [shape: f32[1,128], index: 6, kind: input, shape index: {}]   ;;  %s817_s7 = inlined_call_operand.vmem [shape: f32[8,128], index: 7, kind: output, shape index: {}]  }
   0x1   :  { %13 = vsyncpa [#allocation5], 0  ;;  %s665_s24 = smov [#allocation4]   ;;  %s666_s26 = smov [#allocation2]  }
   0x2   :  { %s35_s25 = sshll.u32 %s665_s24, 4  ;;  %s21_s27 = sshll.u32 %s666_s26, 4  ;;  %s36_s25 = int_to_ptr.vmem [resolvable:$true] %s35_s25  ;;  %s713_s27 = int_to_ptr.vmem [resolvable:$true] %s21_s27 }
   0x3   :  { %s595_s30 = scalar_lea.hbm %s813_s3, 2048 }
   0x4   :  { %p596_p0 = scmp.ne.s32.totalorder %s813_s3, %s595_s30  ;;  %p599_p1 = scmp.lt.u32.totalorder %s595_s30, %s813_s3 }
   0x6   :  { %p601_p2 = pnand %p599_p1, %p596_p0 }
   0x8   :  { %604 = shalt.err (!%p601_p2)
}
   0x9   :  { %s605_s12 = scalar_lea.vmem %s36_s25, 2048  ;;  %p610_p4 = scmp.lt.s32.totalorder %s36_s25, %s36_s25 }
   0xa   :  { %p606_p3 = scmp.ne.s32.totalorder %s36_s25, %s605_s12  ;;  %p611_p5 = scmp.lt.s32.totalorder %s605_s12, %s605_s12 }
   0xc   :  { %p612_p6 = por %p611_p5, %p610_p4 }
   0xe   :  { %p613_p7 = pnand %p612_p6, %p606_p3 }
  0x10   :  { %616 = shalt.err (!%p613_p7)
}
  0x11   :  { %s667_s13 = smov 128   ;;  %s668_s14 = smov 8  }
  0x12   :  { %41 = dma.hbm_to_vmem [thread:$0]  %s813_s3, 2048, %s36_s25, [#allocation5], %s667_s13, %s667_s13, %s668_s14  }
  0x13   :  { %s617_s19 = scalar_lea.hbm %s811_s1, 2048 }
  0x14   :  { %p618_p8 = scmp.ne.s32.totalorder %s811_s1, %s617_s19  ;;  %p621_p9 = scmp.lt.u32.totalorder %s617_s19, %s811_s1 }
  0x16   :  { %p623_p10 = pnand %p621_p9, %p618_p8 }
  0x18   :  { %626 = shalt.err (!%p623_p10)
}
  0x19   :  { %s627_s24 = scalar_lea.vmem %s713_s27, 2048  ;;  %p632_p12 = scmp.lt.s32.totalorder %s713_s27, %s713_s27 }
  0x1a   :  { %p628_p11 = scmp.ne.s32.totalorder %s713_s27, %s627_s24  ;;  %p633_p13 = scmp.lt.s32.totalorder %s627_s24, %s627_s24 }
  0x1c   :  { %p634_p0 = por %p633_p13, %p632_p12 }
  0x1e   :  { %p635_p1 = pnand %p634_p0, %p628_p11 }
  0x20   :  { %638 = shalt.err (!%p635_p1)
}
  0x21   :  { %27 = dma.hbm_to_vmem [thread:$0]  %s811_s1, 2048, %s713_s27, [#allocation3], %s667_s13, %s667_s13, %s668_s14  }
  0x22   :  { %s669_s26 = smov [#allocation6]   ;;  %s639_s8 = scalar_lea.hbm %s815_s5, 2048 }
  0x23   :  { %s49_s28 = sshll.u32 %s669_s26, 4  ;;  %p640_p2 = scmp.ne.s32.totalorder %s815_s5, %s639_s8  ;;  %s50_s28 = int_to_ptr.vmem [resolvable:$true] %s49_s28 }
  0x24   :  { %p643_p3 = scmp.lt.u32.totalorder %s639_s8, %s815_s5 }
  0x26   :  { %p645_p4 = pnand %p643_p3, %p640_p2 }
  0x28   :  { %648 = shalt.err (!%p645_p4)
}
  0x29   :  { %s649_s15 = scalar_lea.vmem %s50_s28, 2048  ;;  %p654_p6 = scmp.lt.s32.totalorder %s50_s28, %s50_s28 }
  0x2a   :  { %p650_p5 = scmp.ne.s32.totalorder %s50_s28, %s649_s15  ;;  %p655_p7 = scmp.lt.s32.totalorder %s649_s15, %s649_s15 }
  0x2c   :  { %p656_p8 = por %p655_p7, %p654_p6 }
  0x2e   :  { %p657_p9 = pnand %p656_p8, %p650_p5 }
  0x30   :  { %660 = shalt.err (!%p657_p9)
}
  0x31   :  { %55 = dma.hbm_to_vmem [thread:$0]  %s815_s5, 2048, %s50_s28, [#allocation5], %s667_s13, %s667_s13, %s668_s14  }
  0x32   :  { %661 = dma.done.wait [#allocation3], 2048  }
  0x33   :  { %662 = vsyncadd [#allocation3], 4294965248 }
  0x34   :  { %663 = dma.done.wait [#allocation5], 4096  }
  0x35   :  { %664 = vsyncadd [#allocation5], 4294963200  ;;  %v670_v0 = vmov 0.0|0.0   ;;  %vm671_vm0 = vmmov 0   ;;  %v672_v1 = vmov 0.0   ;;  %v68_v2 = vld [vmem:[#allocation2] sm:$0xff] }
  0x36   :  { %515 = vmatprep.subr.bf16.mxu0 %v670_v0  ;;  %442 = vmatprep.mubr.msk.f32.mxu0 %vm671_vm0, %v672_v1  ;;  %v69_v3 = vld [vmem:[#allocation2 + $0x8] sm:$0xff]  ;;  %v70_v4 = vld [vmem:[#allocation2 + $0x10] sm:$0xff]  ;;  %v71_v6 = vld [vmem:[#allocation2 + $0x18] sm:$0xff] }
  0x37   :  { %539 = vmatprep.subr.bf16.mxu1 %v670_v0  ;;  %477 = vmatprep.mubr.msk.f32.mxu1 %vm671_vm0, %v672_v1  ;;  %v516_v5 = vpack.c.bf16 %v69_v3, %v68_v2  ;;  %v519_v7 = vpack.c.bf16 %v71_v6, %v70_v4  ;;  %v72_v8 = vld [vmem:[#allocation2 + $0x20] sm:$0xff]  ;;  %v73_v9 = vld [vmem:[#allocation2 + $0x28] sm:$0xff]  ;;  %v164_v12 = vld [vmem:[#allocation4 + $0x10] sm:$0xff] }
  0x38   :  { %v162_v10 = vld [vmem:[#allocation4] sm:$0xff]  ;;  %v163_v11 = vld [vmem:[#allocation4 + $0x8] sm:$0xff]  ;;  %v165_v13 = vld [vmem:[#allocation4 + $0x18] sm:$0xff]  ;;  %v522_v14 = vpack.c.bf16 %v73_v9, %v72_v8 }
  0x39   :  { %517 = vmatpush3.bf16.msra.mxu0 %v516_v5  ;;  %v540_v15 = vpack.c.bf16 %v163_v11, %v162_v10  ;;  %v74_v16 = vld [vmem:[#allocation2 + $0x30] sm:$0xff]  ;;  %v75_v17 = vld [vmem:[#allocation2 + $0x38] sm:$0xff]  ;;  %v543_v18 = vpack.c.bf16 %v165_v13, %v164_v12  ;;  %v166_v19 = vld [vmem:[#allocation4 + $0x20] sm:$0xff] }
  0x3a   :  { %518 = vmatprep.subr.bf16.mxu0 %v670_v0  ;;  %v167_v20 = vld [vmem:[#allocation4 + $0x28] sm:$0xff]  ;;  %v525_v21 = vpack.c.bf16 %v75_v17, %v74_v16  ;;  %v76_v22 = vld [vmem:[#allocation2 + $0x40] sm:$0xff]  ;;  %v168_v25 = vld [vmem:[#allocation4 + $0x30] sm:$0xff] }
  0x3b   :  { %541 = vmatpush3.bf16.msra.mxu1 %v540_v15  ;;  %v77_v23 = vld [vmem:[#allocation2 + $0x48] sm:$0xff]  ;;  %v546_v24 = vpack.c.bf16 %v167_v20, %v166_v19  ;;  %v169_v26 = vld [vmem:[#allocation4 + $0x38] sm:$0xff]  ;;  %v78_v28 = vld [vmem:[#allocation2 + $0x50] sm:$0xff] }
  0x3c   :  { %542 = vmatprep.subr.bf16.mxu1 %v670_v0  ;;  %v528_v27 = vpack.c.bf16 %v77_v23, %v76_v22  ;;  %v79_v29 = vld [vmem:[#allocation2 + $0x58] sm:$0xff]  ;;  %v549_v30 = vpack.c.bf16 %v169_v26, %v168_v25  ;;  %v170_v31 = vld [vmem:[#allocation4 + $0x40] sm:$0xff]  ;;  %v171_v32 = vld [vmem:[#allocation4 + $0x48] sm:$0xff] }
  0x3d   :  { %520 = vmatpush3.bf16.msra.mxu0 %v519_v7  ;;  %v531_v33 = vpack.c.bf16 %v79_v29, %v78_v28  ;;  %v80_v34 = vld [vmem:[#allocation2 + $0x60] sm:$0xff]  ;;  %v81_v35 = vld [vmem:[#allocation2 + $0x68] sm:$0xff]  ;;  %v552_v36 = vpack.c.bf16 %v171_v32, %v170_v31  ;;  %v172_v37 = vld [vmem:[#allocation4 + $0x50] sm:$0xff] }
  0x3e   :  { %521 = vmatprep.subr.bf16.mxu0 %v670_v0  ;;  %v173_v38 = vld [vmem:[#allocation4 + $0x58] sm:$0xff]  ;;  %v534_v39 = vpack.c.bf16 %v81_v35, %v80_v34  ;;  %v82_v40 = vld [vmem:[#allocation2 + $0x70] sm:$0xff]  ;;  %v174_v43 = vld [vmem:[#allocation4 + $0x60] sm:$0xff] }
  0x3f   :  { %544 = vmatpush3.bf16.msra.mxu1 %v543_v18  ;;  %v83_v41 = vld [vmem:[#allocation2 + $0x78] sm:$0xff]  ;;  %v555_v42 = vpack.c.bf16 %v173_v38, %v172_v37  ;;  %v175_v44 = vld [vmem:[#allocation4 + $0x68] sm:$0xff]  ;;  %v67_v47 = vld [vmem:[%s810_s0] sm:$0xff] }
  0x40   :  { %545 = vmatprep.subr.bf16.mxu1 %v670_v0  ;;  %v537_v45 = vpack.c.bf16 %v83_v41, %v82_v40  ;;  %v558_v46 = vpack.c.bf16 %v175_v44, %v174_v43  ;;  %v176_v48 = vld [vmem:[#allocation4 + $0x70] sm:$0xff]  ;;  %v177_v49 = vld [vmem:[#allocation4 + $0x78] sm:$0xff]  ;;  %v256_v51 = vld [vmem:[#allocation6] sm:$0xff] }
  0x41   :  { %523 = vmatpush3.bf16.msra.mxu0 %v522_v14  ;;  %v561_v50 = vpack.c.bf16 %v177_v49, %v176_v48  ;;  %v257_v52 = vld [vmem:[#allocation6 + $0x8] sm:$0xff]  ;;  %v258_v53 = vld [vmem:[#allocation6 + $0x10] sm:$0xff]  ;;  %v259_v55 = vld [vmem:[#allocation6 + $0x18] sm:$0xff] }
  0x42   :  { %524 = vmatprep.subr.bf16.mxu0 %v670_v0  ;;  %v564_v54 = vpack.c.bf16 %v257_v52, %v256_v51  ;;  %v567_v56 = vpack.c.bf16 %v259_v55, %v258_v53  ;;  %v260_v57 = vld [vmem:[#allocation6 + $0x20] sm:$0xff]  ;;  %v261_v58 = vld [vmem:[#allocation6 + $0x28] sm:$0xff]  ;;  %v262_v60 = vld [vmem:[#allocation6 + $0x30] sm:$0xff] }
  0x43   :  { %547 = vmatpush3.bf16.msra.mxu1 %v546_v24  ;;  %v570_v59 = vpack.c.bf16 %v261_v58, %v260_v57  ;;  %v263_v61 = vld [vmem:[#allocation6 + $0x38] sm:$0xff]  ;;  %v264_v63 = vld [vmem:[#allocation6 + $0x40] sm:$0xff]  ;;  %v266_v3 = vld [vmem:[#allocation6 + $0x50] sm:$0xff] }
  0x44   :  { %548 = vmatprep.subr.bf16.mxu1 %v670_v0  ;;  %v573_v62 = vpack.c.bf16 %v263_v61, %v262_v60  ;;  %v267_v4 = vld [vmem:[#allocation6 + $0x58] sm:$0xff]  ;;  %v268_v6 = vld [vmem:[#allocation6 + $0x60] sm:$0xff]  ;;  %v269_v7 = vld [vmem:[#allocation6 + $0x68] sm:$0xff] }
  0x45   :  { %526 = vmatpush3.bf16.msra.mxu0 %v525_v21  ;;  %v579_v5 = vpack.c.bf16 %v267_v4, %v266_v3  ;;  %v582_v8 = vpack.c.bf16 %v269_v7, %v268_v6  ;;  %v356_v9 = vld [vmem:[%s812_s2] ss:$0 sm:$0xff]  ;;  %v270_v14 = vld [vmem:[#allocation6 + $0x70] sm:$0xff]  ;;  %v271_v15 = vld [vmem:[#allocation6 + $0x78] sm:$0xff] }
  0x46   :  { %527 = vmatprep.subr.bf16.mxu0 %v670_v0  ;;  %v585_v16 = vpack.c.bf16 %v271_v15, %v270_v14  ;;  %v357_v17 = vld [vmem:[%s814_s4] ss:$0 sm:$0xff] }
  0x47   :  { %550 = vmatpush3.bf16.msra.mxu1 %v549_v30  ;;  %v358_v21 = vld [vmem:[%s816_s6] ss:$0 sm:$0xff] }
  0x48   :  { %551 = vmatprep.subr.bf16.mxu1 %v670_v0 }
  0x49   :  { %529 = vmatpush3.bf16.msra.mxu0 %v528_v27 }
  0x4a   :  { %530 = vmatprep.subr.bf16.mxu0 %v670_v0 }
  0x4b   :  { %553 = vmatpush3.bf16.msra.mxu1 %v552_v36 }
  0x4c   :  { %554 = vmatprep.subr.bf16.mxu1 %v670_v0 }
  0x4d   :  { %532 = vmatpush3.bf16.msra.mxu0 %v531_v33 }
  0x4e   :  { %533 = vmatprep.subr.bf16.mxu0 %v670_v0 }
  0x4f   :  { %556 = vmatpush3.bf16.msra.mxu1 %v555_v42 }
  0x50   :  { %557 = vmatprep.subr.bf16.mxu1 %v670_v0 }
  0x51   :  { %535 = vmatpush3.bf16.msra.mxu0 %v534_v39 }
  0x52   :  { %536 = vmatprep.subr.bf16.mxu0 %v670_v0 }
  0x53   :  { %559 = vmatpush3.bf16.msra.mxu1 %v558_v46 }
  0x54   :  { %560 = vmatprep.subr.bf16.mxu1 %v670_v0 }
  0x55   :  { %538 = vmatpush3.bf16.msra.mxu0 %v537_v45 }
  0x56   :  { %563 = vmatprep.subr.bf16.mxu0 %v670_v0 }
  0x57   :  { %562 = vmatpush3.bf16.msra.mxu1 %v561_v50 }
  0x58   :  { %443 = vmatmul.mubr.f32.vlgmr.msra.gmra.mrb[0].mxu0 %v67_v47 }
  0x59   :  { %512 = vmatprep.mubr.msk.f32.mxu0 %vm671_vm0, %v672_v1  ;;  %565 = vmatpush3.bf16.msra.mxu0 %v564_v54  ;;  %v265_v1 = vld [vmem:[#allocation6 + $0x48] sm:$0xff] }
  0x5a   :  { %566 = vmatprep.subr.bf16.mxu0 %v670_v0  ;;  %v576_v2 = vpack.c.bf16 %v265_v1, %v264_v63 }
  0x5d   :  { %568 = vmatpush3.bf16.msra.mxu0 %v567_v56 }
  0x5e   :  { %569 = vmatprep.subr.bf16.mxu0 %v670_v0 }
  0x61   :  { %571 = vmatpush3.bf16.msra.mxu0 %v570_v59 }
  0x62   :  { %572 = vmatprep.subr.bf16.mxu0 %v670_v0 }
  0x65   :  { %574 = vmatpush3.bf16.msra.mxu0 %v573_v62 }
  0x66   :  { %575 = vmatprep.subr.bf16.mxu0 %v670_v0 }
  0x69   :  { %577 = vmatpush3.bf16.msra.mxu0 %v576_v2 }
  0x6a   :  { %578 = vmatprep.subr.bf16.mxu0 %v670_v0 }
  0x6d   :  { %580 = vmatpush3.bf16.msra.mxu0 %v579_v5 }
  0x6e   :  { %581 = vmatprep.subr.bf16.mxu0 %v670_v0 }
  0x71   :  { %583 = vmatpush3.bf16.msra.mxu0 %v582_v8 }
  0x72   :  { %584 = vmatprep.subr.bf16.mxu0 %v670_v0 }
  0x75   :  { %586 = vmatpush3.bf16.msra.mxu0 %v585_v16 }
 0x12b   :  { %v157_v10 = vpop.f32.mrb[0].mxu0 }
 0x12c   :  { %v158_v11 = vadd.f32 %v356_v9, %v157_v10  ;;  %v444_v12 = vpop.f32.mrb[1].mxu0 }
 0x12e   :  { %v161_v13 = vmax.f32 %v158_v11, 0.0 }
 0x130   :  { %478 = vmatmul.mubr.f32.vlgmr.msra.gmra.mrb[0].mxu1 %v161_v13 }
 0x203   :  { %v251_v18 = vpop.f32.mrb[0].mxu1 }
 0x204   :  { %v252_v19 = vadd.f32 %v357_v17, %v251_v18  ;;  %v479_v0 = vpop.f32.mrb[1].mxu1 }
 0x206   :  { %v255_v20 = vmax.f32 %v252_v19, 0.0 }
 0x208   :  { %513 = vmatmul.mubr.f32.vlgmr.msra.gmra.mrb[2].mxu0 %v255_v20 }
 0x2db   :  { %v345_v22 = vpop.f32.mrb[2].mxu0 }
 0x2dc   :  { %v346_v23 = vadd.f32 %v358_v21, %v345_v22  ;;  %v514_v24 = vpop.f32.mrb[3].mxu0 }
 0x2de   :  { %349 = vst [vmem:[%s817_s7] sm:$0xff] %v346_v23 }
 0x2df   :  { %354 = vsyncpa [#allocation3], 1 }
 0x2e0   :  { %355 = vsyncpa [#allocation5], 1 }

// kernel: _dqn_forward_jit.1
= control target key start
LH: loop header
LB: loop body
LE: loop exit
PB: predicated region body
PF: predicated region fallthrough
CT: control target
= control target key end

     0   :  { %12 = vsyncpa [#allocation3], 0  ;;  %s810_s0 = inlined_call_operand.vmem [shape: f32[8,128], index: 0, kind: input, shape index: {}]   ;;  %s811_s1 = inlined_call_operand.hbm [shape: f32[128,128], index: 1, kind: input, shape index: {}]   ;;  %s812_s2 = inlined_call_operand.vmem [shape: f32[1,128], index: 2, kind: input, shape index: {}]   ;;  %s813_s3 = inlined_call_operand.hbm [shape: f32[128,128], index: 3, kind: input, shape index: {}]   ;;  %s814_s4 = inlined_call_operand.vmem [shape: f32[1,128], index: 4, kind: input, shape index: {}]   ;;  %s815_s5 = inlined_call_operand.hbm [shape: f32[128,128], index: 5, kind: input, shape index: {}]   ;;  %s816_s6 = inlined_call_operand.vmem [shape: f32[1,128], index: 6, kind: input, shape index: {}]   ;;  %s817_s7 = inlined_call_operand.vmem [shape: f32[8,128], index: 7, kind: output, shape index: {}]  }
   0x1   :  { %13 = vsyncpa [#allocation5], 0  ;;  %s665_s24 = smov [#allocation4]   ;;  %s666_s26 = smov [#allocation2]  }
   0x2   :  { %s35_s25 = sshll.u32 %s665_s24, 4  ;;  %s21_s27 = sshll.u32 %s666_s26, 4  ;;  %s36_s25 = int_to_ptr.vmem [resolvable:$true] %s35_s25  ;;  %s713_s27 = int_to_ptr.vmem [resolvable:$true] %s21_s27 }
   0x3   :  { %s595_s30 = scalar_lea.hbm %s813_s3, 2048 }
   0x4   :  { %p596_p0 = scmp.ne.s32.totalorder %s813_s3, %s595_s30  ;;  %p599_p1 = scmp.lt.u32.totalorder %s595_s30, %s813_s3 }
   0x6   :  { %p601_p2 = pnand %p599_p1, %p596_p0 }
   0x8   :  { %604 = shalt.err (!%p601_p2)
}
   0x9   :  { %s605_s12 = scalar_lea.vmem %s36_s25, 2048  ;;  %p610_p4 = scmp.lt.s32.totalorder %s36_s25, %s36_s25 }
   0xa   :  { %p606_p3 = scmp.ne.s32.totalorder %s36_s25, %s605_s12  ;;  %p611_p5 = scmp.lt.s32.totalorder %s605_s12, %s605_s12 }
   0xc   :  { %p612_p6 = por %p611_p5, %p610_p4 }
   0xe   :  { %p613_p7 = pnand %p612_p6, %p606_p3 }
  0x10   :  { %616 = shalt.err (!%p613_p7)
}
  0x11   :  { %s667_s13 = smov 128   ;;  %s668_s14 = smov 8  }
  0x12   :  { %41 = dma.hbm_to_vmem [thread:$0]  %s813_s3, 2048, %s36_s25, [#allocation5], %s667_s13, %s667_s13, %s668_s14  }
  0x13   :  { %s617_s19 = scalar_lea.hbm %s811_s1, 2048 }
  0x14   :  { %p618_p8 = scmp.ne.s32.totalorder %s811_s1, %s617_s19  ;;  %p621_p9 = scmp.lt.u32.totalorder %s617_s19, %s811_s1 }
  0x16   :  { %p623_p10 = pnand %p621_p9, %p618_p8 }
  0x18   :  { %626 = shalt.err (!%p623_p10)
}
  0x19   :  { %s627_s24 = scalar_lea.vmem %s713_s27, 2048  ;;  %p632_p12 = scmp.lt.s32.totalorder %s713_s27, %s713_s27 }
  0x1a   :  { %p628_p11 = scmp.ne.s32.totalorder %s713_s27, %s627_s24  ;;  %p633_p13 = scmp.lt.s32.totalorder %s627_s24, %s627_s24 }
  0x1c   :  { %p634_p0 = por %p633_p13, %p632_p12 }
  0x1e   :  { %p635_p1 = pnand %p634_p0, %p628_p11 }
  0x20   :  { %638 = shalt.err (!%p635_p1)
}
  0x21   :  { %27 = dma.hbm_to_vmem [thread:$0]  %s811_s1, 2048, %s713_s27, [#allocation3], %s667_s13, %s667_s13, %s668_s14  }
  0x22   :  { %s669_s26 = smov [#allocation6]   ;;  %s639_s8 = scalar_lea.hbm %s815_s5, 2048 }
  0x23   :  { %s49_s28 = sshll.u32 %s669_s26, 4  ;;  %p640_p2 = scmp.ne.s32.totalorder %s815_s5, %s639_s8  ;;  %s50_s28 = int_to_ptr.vmem [resolvable:$true] %s49_s28 }
  0x24   :  { %p643_p3 = scmp.lt.u32.totalorder %s639_s8, %s815_s5 }
  0x26   :  { %p645_p4 = pnand %p643_p3, %p640_p2 }
  0x28   :  { %648 = shalt.err (!%p645_p4)
}
  0x29   :  { %s649_s15 = scalar_lea.vmem %s50_s28, 2048  ;;  %p654_p6 = scmp.lt.s32.totalorder %s50_s28, %s50_s28 }
  0x2a   :  { %p650_p5 = scmp.ne.s32.totalorder %s50_s28, %s649_s15  ;;  %p655_p7 = scmp.lt.s32.totalorder %s649_s15, %s649_s15 }
  0x2c   :  { %p656_p8 = por %p655_p7, %p654_p6 }
  0x2e   :  { %p657_p9 = pnand %p656_p8, %p650_p5 }
  0x30   :  { %660 = shalt.err (!%p657_p9)
}
  0x31   :  { %55 = dma.hbm_to_vmem [thread:$0]  %s815_s5, 2048, %s50_s28, [#allocation5], %s667_s13, %s667_s13, %s668_s14  }
  0x32   :  { %661 = dma.done.wait [#allocation3], 2048  }
  0x33   :  { %662 = vsyncadd [#allocation3], 4294965248 }
  0x34   :  { %663 = dma.done.wait [#allocation5], 4096  }
  0x35   :  { %664 = vsyncadd [#allocation5], 4294963200  ;;  %v670_v0 = vmov 0.0|0.0   ;;  %vm671_vm0 = vmmov 0   ;;  %v672_v1 = vmov 0.0   ;;  %v68_v2 = vld [vmem:[#allocation2] sm:$0xff] }
  0x36   :  { %515 = vmatprep.subr.bf16.mxu0 %v670_v0  ;;  %442 = vmatprep.mubr.msk.f32.mxu0 %vm671_vm0, %v672_v1  ;;  %v69_v3 = vld [vmem:[#allocation2 + $0x8] sm:$0xff]  ;;  %v70_v4 = vld [vmem:[#allocation2 + $0x10] sm:$0xff]  ;;  %v71_v6 = vld [vmem:[#allocation2 + $0x18] sm:$0xff] }
  0x37   :  { %539 = vmatprep.subr.bf16.mxu1 %v670_v0  ;;  %477 = vmatprep.mubr.msk.f32.mxu1 %vm671_vm0, %v672_v1  ;;  %v516_v5 = vpack.c.bf16 %v69_v3, %v68_v2  ;;  %v519_v7 = vpack.c.bf16 %v71_v6, %v70_v4  ;;  %v72_v8 = vld [vmem:[#allocation2 + $0x20] sm:$0xff]  ;;  %v73_v9 = vld [vmem:[#allocation2 + $0x28] sm:$0xff]  ;;  %v164_v12 = vld [vmem:[#allocation4 + $0x10] sm:$0xff] }
  0x38   :  { %v162_v10 = vld [vmem:[#allocation4] sm:$0xff]  ;;  %v163_v11 = vld [vmem:[#allocation4 + $0x8] sm:$0xff]  ;;  %v165_v13 = vld [vmem:[#allocation4 + $0x18] sm:$0xff]  ;;  %v522_v14 = vpack.c.bf16 %v73_v9, %v72_v8 }
  0x39   :  { %517 = vmatpush3.bf16.msra.mxu0 %v516_v5  ;;  %v540_v15 = vpack.c.bf16 %v163_v11, %v162_v10  ;;  %v74_v16 = vld [vmem:[#allocation2 + $0x30] sm:$0xff]  ;;  %v75_v17 = vld [vmem:[#allocation2 + $0x38] sm:$0xff]  ;;  %v543_v18 = vpack.c.bf16 %v165_v13, %v164_v12  ;;  %v166_v19 = vld [vmem:[#allocation4 + $0x20] sm:$0xff] }
  0x3a   :  { %518 = vmatprep.subr.bf16.mxu0 %v670_v0  ;;  %v167_v20 = vld [vmem:[#allocation4 + $0x28] sm:$0xff]  ;;  %v525_v21 = vpack.c.bf16 %v75_v17, %v74_v16  ;;  %v76_v22 = vld [vmem:[#allocation2 + $0x40] sm:$0xff]  ;;  %v168_v25 = vld [vmem:[#allocation4 + $0x30] sm:$0xff] }
  0x3b   :  { %541 = vmatpush3.bf16.msra.mxu1 %v540_v15  ;;  %v77_v23 = vld [vmem:[#allocation2 + $0x48] sm:$0xff]  ;;  %v546_v24 = vpack.c.bf16 %v167_v20, %v166_v19  ;;  %v169_v26 = vld [vmem:[#allocation4 + $0x38] sm:$0xff]  ;;  %v78_v28 = vld [vmem:[#allocation2 + $0x50] sm:$0xff] }
  0x3c   :  { %542 = vmatprep.subr.bf16.mxu1 %v670_v0  ;;  %v528_v27 = vpack.c.bf16 %v77_v23, %v76_v22  ;;  %v79_v29 = vld [vmem:[#allocation2 + $0x58] sm:$0xff]  ;;  %v549_v30 = vpack.c.bf16 %v169_v26, %v168_v25  ;;  %v170_v31 = vld [vmem:[#allocation4 + $0x40] sm:$0xff]  ;;  %v171_v32 = vld [vmem:[#allocation4 + $0x48] sm:$0xff] }
  0x3d   :  { %520 = vmatpush3.bf16.msra.mxu0 %v519_v7  ;;  %v531_v33 = vpack.c.bf16 %v79_v29, %v78_v28  ;;  %v80_v34 = vld [vmem:[#allocation2 + $0x60] sm:$0xff]  ;;  %v81_v35 = vld [vmem:[#allocation2 + $0x68] sm:$0xff]  ;;  %v552_v36 = vpack.c.bf16 %v171_v32, %v170_v31  ;;  %v172_v37 = vld [vmem:[#allocation4 + $0x50] sm:$0xff] }
  0x3e   :  { %521 = vmatprep.subr.bf16.mxu0 %v670_v0  ;;  %v173_v38 = vld [vmem:[#allocation4 + $0x58] sm:$0xff]  ;;  %v534_v39 = vpack.c.bf16 %v81_v35, %v80_v34  ;;  %v82_v40 = vld [vmem:[#allocation2 + $0x70] sm:$0xff]  ;;  %v174_v43 = vld [vmem:[#allocation4 + $0x60] sm:$0xff] }
  0x3f   :  { %544 = vmatpush3.bf16.msra.mxu1 %v543_v18  ;;  %v83_v41 = vld [vmem:[#allocation2 + $0x78] sm:$0xff]  ;;  %v555_v42 = vpack.c.bf16 %v173_v38, %v172_v37  ;;  %v175_v44 = vld [vmem:[#allocation4 + $0x68] sm:$0xff]  ;;  %v67_v47 = vld [vmem:[%s810_s0] sm:$0xff] }
  0x40   :  { %545 = vmatprep.subr.bf16.mxu1 %v670_v0  ;;  %v537_v45 = vpack.c.bf16 %v83_v41, %v82_v40  ;;  %v558_v46 = vpack.c.bf16 %v175_v44, %v174_v43  ;;  %v176_v48 = vld [vmem:[#allocation4 + $0x70] sm:$0xff]  ;;  %v177_v49 = vld [vmem:[#allocation4 + $0x78] sm:$0xff]  ;;  %v256_v51 = vld [vmem:[#allocation6] sm:$0xff] }
  0x41   :  { %523 = vmatpush3.bf16.msra.mxu0 %v522_v14  ;;  %v561_v50 = vpack.c.bf16 %v177_v49, %v176_v48  ;;  %v257_v52 = vld [vmem:[#allocation6 + $0x8] sm:$0xff]  ;;  %v258_v53 = vld [vmem:[#allocation6 + $0x10] sm:$0xff]  ;;  %v259_v55 = vld [vmem:[#allocation6 + $0x18] sm:$0xff] }
  0x42   :  { %524 = vmatprep.subr.bf16.mxu0 %v670_v0  ;;  %v564_v54 = vpack.c.bf16 %v257_v52, %v256_v51  ;;  %v567_v56 = vpack.c.bf16 %v259_v55, %v258_v53  ;;  %v260_v57 = vld [vmem:[#allocation6 + $0x20] sm:$0xff]  ;;  %v261_v58 = vld [vmem:[#allocation6 + $0x28] sm:$0xff]  ;;  %v262_v60 = vld [vmem:[#allocation6 + $0x30] sm:$0xff] }
  0x43   :  { %547 = vmatpush3.bf16.msra.mxu1 %v546_v24  ;;  %v570_v59 = vpack.c.bf16 %v261_v58, %v260_v57  ;;  %v263_v61 = vld [vmem:[#allocation6 + $0x38] sm:$0xff]  ;;  %v264_v63 = vld [vmem:[#allocation6 + $0x40] sm:$0xff]  ;;  %v266_v3 = vld [vmem:[#allocation6 + $0x50] sm:$0xff] }
  0x44   :  { %548 = vmatprep.subr.bf16.mxu1 %v670_v0  ;;  %v573_v62 = vpack.c.bf16 %v263_v61, %v262_v60  ;;  %v267_v4 = vld [vmem:[#allocation6 + $0x58] sm:$0xff]  ;;  %v268_v6 = vld [vmem:[#allocation6 + $0x60] sm:$0xff]  ;;  %v269_v7 = vld [vmem:[#allocation6 + $0x68] sm:$0xff] }
  0x45   :  { %526 = vmatpush3.bf16.msra.mxu0 %v525_v21  ;;  %v579_v5 = vpack.c.bf16 %v267_v4, %v266_v3  ;;  %v582_v8 = vpack.c.bf16 %v269_v7, %v268_v6  ;;  %v356_v9 = vld [vmem:[%s812_s2] ss:$0 sm:$0xff]  ;;  %v270_v14 = vld [vmem:[#allocation6 + $0x70] sm:$0xff]  ;;  %v271_v15 = vld [vmem:[#allocation6 + $0x78] sm:$0xff] }
  0x46   :  { %527 = vmatprep.subr.bf16.mxu0 %v670_v0  ;;  %v585_v16 = vpack.c.bf16 %v271_v15, %v270_v14  ;;  %v357_v17 = vld [vmem:[%s814_s4] ss:$0 sm:$0xff] }
  0x47   :  { %550 = vmatpush3.bf16.msra.mxu1 %v549_v30  ;;  %v358_v21 = vld [vmem:[%s816_s6] ss:$0 sm:$0xff] }
  0x48   :  { %551 = vmatprep.subr.bf16.mxu1 %v670_v0 }
  0x49   :  { %529 = vmatpush3.bf16.msra.mxu0 %v528_v27 }
  0x4a   :  { %530 = vmatprep.subr.bf16.mxu0 %v670_v0 }
  0x4b   :  { %553 = vmatpush3.bf16.msra.mxu1 %v552_v36 }
  0x4c   :  { %554 = vmatprep.subr.bf16.mxu1 %v670_v0 }
  0x4d   :  { %532 = vmatpush3.bf16.msra.mxu0 %v531_v33 }
  0x4e   :  { %533 = vmatprep.subr.bf16.mxu0 %v670_v0 }
  0x4f   :  { %556 = vmatpush3.bf16.msra.mxu1 %v555_v42 }
  0x50   :  { %557 = vmatprep.subr.bf16.mxu1 %v670_v0 }
  0x51   :  { %535 = vmatpush3.bf16.msra.mxu0 %v534_v39 }
  0x52   :  { %536 = vmatprep.subr.bf16.mxu0 %v670_v0 }
  0x53   :  { %559 = vmatpush3.bf16.msra.mxu1 %v558_v46 }
  0x54   :  { %560 = vmatprep.subr.bf16.mxu1 %v670_v0 }
  0x55   :  { %538 = vmatpush3.bf16.msra.mxu0 %v537_v45 }
  0x56   :  { %563 = vmatprep.subr.bf16.mxu0 %v670_v0 }
  0x57   :  { %562 = vmatpush3.bf16.msra.mxu1 %v561_v50 }
  0x58   :  { %443 = vmatmul.mubr.f32.vlgmr.msra.gmra.mrb[0].mxu0 %v67_v47 }
  0x59   :  { %512 = vmatprep.mubr.msk.f32.mxu0 %vm671_vm0, %v672_v1  ;;  %565 = vmatpush3.bf16.msra.mxu0 %v564_v54  ;;  %v265_v1 = vld [vmem:[#allocation6 + $0x48] sm:$0xff] }
  0x5a   :  { %566 = vmatprep.subr.bf16.mxu0 %v670_v0  ;;  %v576_v2 = vpack.c.bf16 %v265_v1, %v264_v63 }
  0x5d   :  { %568 = vmatpush3.bf16.msra.mxu0 %v567_v56 }
  0x5e   :  { %569 = vmatprep.subr.bf16.mxu0 %v670_v0 }
  0x61   :  { %571 = vmatpush3.bf16.msra.mxu0 %v570_v59 }
  0x62   :  { %572 = vmatprep.subr.bf16.mxu0 %v670_v0 }
  0x65   :  { %574 = vmatpush3.bf16.msra.mxu0 %v573_v62 }
  0x66   :  { %575 = vmatprep.subr.bf16.mxu0 %v670_v0 }
  0x69   :  { %577 = vmatpush3.bf16.msra.mxu0 %v576_v2 }
  0x6a   :  { %578 = vmatprep.subr.bf16.mxu0 %v670_v0 }
  0x6d   :  { %580 = vmatpush3.bf16.msra.mxu0 %v579_v5 }
  0x6e   :  { %581 = vmatprep.subr.bf16.mxu0 %v670_v0 }
  0x71   :  { %583 = vmatpush3.bf16.msra.mxu0 %v582_v8 }
  0x72   :  { %584 = vmatprep.subr.bf16.mxu0 %v670_v0 }
  0x75   :  { %586 = vmatpush3.bf16.msra.mxu0 %v585_v16 }
 0x12b   :  { %v157_v10 = vpop.f32.mrb[0].mxu0 }
 0x12c   :  { %v158_v11 = vadd.f32 %v356_v9, %v157_v10  ;;  %v444_v12 = vpop.f32.mrb[1].mxu0 }
 0x12e   :  { %v161_v13 = vmax.f32 %v158_v11, 0.0 }
 0x130   :  { %478 = vmatmul.mubr.f32.vlgmr.msra.gmra.mrb[0].mxu1 %v161_v13 }
 0x203   :  { %v251_v18 = vpop.f32.mrb[0].mxu1 }
 0x204   :  { %v252_v19 = vadd.f32 %v357_v17, %v251_v18  ;;  %v479_v0 = vpop.f32.mrb[1].mxu1 }
 0x206   :  { %v255_v20 = vmax.f32 %v252_v19, 0.0 }
 0x208   :  { %513 = vmatmul.mubr.f32.vlgmr.msra.gmra.mrb[2].mxu0 %v255_v20 }
 0x2db   :  { %v345_v22 = vpop.f32.mrb[2].mxu0 }
 0x2dc   :  { %v346_v23 = vadd.f32 %v358_v21, %v345_v22  ;;  %v514_v24 = vpop.f32.mrb[3].mxu0 }
 0x2de   :  { %349 = vst [vmem:[%s817_s7] sm:$0xff] %v346_v23 }
 0x2df   :  { %354 = vsyncpa [#allocation3], 1 }
 0x2e0   :  { %355 = vsyncpa [#allocation5], 1 }

</bundles_post_ra>
